<compile_context>
chip_gen: v7x
topology: tpu7x:2x2x1
jax: 0.10.0
libtpu: 0.0.40
codegen_flags: <defaults>
</compile_context>

<pallas_src>
import functools
import math

import jax
import jax.numpy as jnp
from jax.experimental import pallas as pl
from jax.experimental.pallas import tpu as pltpu


def _qinvres_kernel(x_ref, m_ref, w1_ref, b1_ref, w2_ref, b2_ref, w3_ref, b3_ref,
                    o_ref, im2col_ref, *, kernel_size, use_res, n_sub):
    hidden = w1_ref.shape[0]
    L = x_ref.shape[1]
    K = kernel_size
    pad = (K - 1) // 2
    sub = L // n_sub

    w1 = w1_ref[...]                                   # (hidden, Cin)      dot dtype
    b1 = b1_ref[...]                                   # (hidden, 1)        f32
    w2 = w2_ref[...]                                   # (hidden, K*hidden) dot dtype
    b2 = b2_ref[...]                                   # (hidden, 1)        f32
    w3 = w3_ref[...]                                   # (Cout, hidden)     dot dtype
    b3 = b3_ref[...]                                   # (Cout, 1)          f32
    # Hoisted (1, sub) boundary masks, one per non-center tap (same for every chunk).
    masks = {t: m_ref[pl.ds(t, 1), :] for t in range(K) if t != pad}

    # Independent column sub-chunks: the serial MXU->EUP->VPU chain of one chunk can be
    # overlapped with the other by the scheduler inside the same basic block.
    for c in range(n_sub):
        cols = pl.ds(c * sub, sub)
        x = x_ref[:, cols]                                          # (Cin, sub) f32

        # ---- expand 1x1 conv (BN scale folded into w1) + bias + tanh ----
        y1 = jnp.dot(w1, x.astype(w1.dtype),
                     preferred_element_type=jnp.float32)            # (hidden, sub)
        y1 = jnp.tanh(y1 + b1)

        # ---- [1,K] conv along W as ONE im2col matmul ----
        # Tap with offset d = t-pad reads column w+d of the same W-row: pltpu.roll
        # shifts lanes (XLU slot), the mask zeroes lanes whose source lies outside
        # their own W-row (this also covers the roll wrap-around at the chunk edge,
        # since sub % W == 0).  Each tap goes straight to the VMEM scratch.
        for t in range(K):
            d = t - pad
            if d == 0:
                tap = y1
            else:
                tap = pltpu.roll(y1, shift=(-d) % sub, axis=1) * masks[t]
            im2col_ref[pl.ds(t * hidden, hidden), cols] = tap

        y2 = jnp.dot(w2, im2col_ref[:, cols].astype(w2.dtype),
                     preferred_element_type=jnp.float32)            # (hidden, sub)
        y2 = jnp.tanh(y2 + b2)

        # ---- project 1x1 conv (BN scale folded into w3) + bias (+ residual) ----
        y3 = jnp.dot(w3, y2.astype(w3.dtype),
                     preferred_element_type=jnp.float32) + b3       # (Cout, sub)
        if use_res:
            y3 = y3 + x
        o_ref[:, cols] = y3.astype(o_ref.dtype)


def _lcm(a, b):
    return a * b // math.gcd(a, b)


def _fold_params(p, dot_dtype):
    """Fold eval-mode BN scale into the conv weights; cast weights to the matmul dtype."""
    w1 = (p["w1t"] * p["s1"]).astype(dot_dtype)
    w2 = (p["w2cat"] * p["s2"]).astype(dot_dtype)
    w3 = (p["w3t"] * p["s3"]).astype(dot_dtype)
    return w1, p["b1"], w2, p["b2"], w3, p["b3"]


def _build_masks(K, W, sub_cols):
    """(K, sub_cols) f32 validity masks: row t zeroes lanes whose tap (offset t-pad)
    falls outside its own W-row.  Pattern repeats every W columns."""
    pad = (K - 1) // 2
    w = jnp.arange(sub_cols, dtype=jnp.int32) % W
    rows = []
    for t in range(K):
        d = t - pad
        if d > 0:
            rows.append(w < W - d)
        elif d < 0:
            rows.append(w >= -d)
        else:
            rows.append(w >= 0)          # center tap: all valid (unused in kernel)
    return jnp.stack(rows, axis=0).astype(jnp.float32)


def _pick_block_cols(HW, W, target):
    """Largest multiple of lcm(W,128) dividing HW and <= target; fallback: full HW
    (always a legal full-dim block; stores may be masked if HW % 128 != 0)."""
    step = _lcm(W, 128)
    c = (min(target, HW) // step) * step
    while c >= step:
        if HW % c == 0:
            return c
        c -= step
    return HW


def qinverted_residual_pallas(x_nchw, p, *, stride=1, dot_dtype=jnp.bfloat16,
                              vmem_budget_bytes=12 << 20):
    assert stride == 1, "kernel implements the stride=1 configuration"
    N, Cin, H, W = x_nchw.shape
    hidden = p["w1t"].shape[0]
    Cout = p["w3t"].shape[0]
    K = p["w2cat"].shape[1] // hidden
    use_res = (stride == 1) and (Cin == Cout)
    HW = H * W

    w1f, b1, w2f, b2, w3f, b3 = _fold_params(p, dot_dtype)

    # Column-block sizing from a VMEM budget (double-buffered f32 I/O + f32 im2col
    # scratch + slack); keeps the same code safe on 64 MiB-VMEM v7x.
    per_col = 4 * 2 * (Cin + Cout) + 4 * K * hidden + 4 * 4 * hidden
    bc = _pick_block_cols(HW, W, max(int(vmem_budget_bytes // per_col), 128))
    nblk = HW // bc

    step = _lcm(W, 128)
    n_sub = 2 if bc % (2 * step) == 0 else 1
    sub_cols = bc // n_sub
    masks = _build_masks(K, W, sub_cols)

    x3 = x_nchw.reshape(N, Cin, HW)      # free: NCHW is already channel-major per sample

    flops = 2 * N * HW * (Cin * hidden + K * hidden * hidden + hidden * Cout)
    bytes_accessed = (Cin + Cout) * N * HW * 4 + sum(int(v.size) * 4 for v in p.values())
    cost = pl.CostEstimate(flops=flops, transcendentals=2 * N * HW * hidden,
                           bytes_accessed=bytes_accessed)

    est_vmem = bc * per_col + 4 * int(w1f.size + w2f.size + w3f.size
                                      + b1.size + b2.size + b3.size + masks.size)
    vmem_limit = int(min(max(2 * est_vmem + (8 << 20), 32 << 20), 48 << 20))

    kernel = functools.partial(_qinvres_kernel, kernel_size=K,
                               use_res=use_res, n_sub=n_sub)

    out3 = pl.pallas_call(
        kernel,
        out_shape=jax.ShapeDtypeStruct((N, Cout, HW), x_nchw.dtype),
        grid_spec=pltpu.PrefetchScalarGridSpec(
            num_scalar_prefetch=0,
            grid=(N, nblk),
            in_specs=[
                pl.BlockSpec((pl.Squeezed(), Cin, bc), lambda n, i: (n, 0, i)),
                pl.BlockSpec((K, sub_cols), lambda n, i: (0, 0)),
                pl.BlockSpec((hidden, Cin), lambda n, i: (0, 0)),
                pl.BlockSpec((hidden, 1), lambda n, i: (0, 0)),
                pl.BlockSpec((hidden, K * hidden), lambda n, i: (0, 0)),
                pl.BlockSpec((hidden, 1), lambda n, i: (0, 0)),
                pl.BlockSpec((Cout, hidden), lambda n, i: (0, 0)),
                pl.BlockSpec((Cout, 1), lambda n, i: (0, 0)),
            ],
            out_specs=pl.BlockSpec((pl.Squeezed(), Cout, bc), lambda n, i: (n, 0, i)),
            scratch_shapes=[pltpu.VMEM((K * hidden, bc), jnp.float32)],
        ),
        compiler_params=pltpu.CompilerParams(
            dimension_semantics=("parallel", "parallel"),
            vmem_limit_bytes=vmem_limit),
        cost_estimate=cost,
    )(x3, masks, w1f, b1, w2f, b2, w3f, b3)

    return out3.reshape(N, Cout, H, W)


def make_params(key, n_in, n_out, expand_ratio, kernel_size=5, eps=1e-5):
    """Deterministic synthetic parameters (PyTorch shapes, pre-flattened to 2-D)."""
    hidden = int(round(n_in * expand_ratio))
    ks = list(jax.random.split(key, 15))

    def folded_bn(kg, kb, km, kv, c):
        gamma = jax.random.uniform(kg, (c,), minval=0.5, maxval=1.5)
        beta = 0.1 * jax.random.normal(kb, (c,))
        mean = 0.1 * jax.random.normal(km, (c,))
        var = jax.random.uniform(kv, (c,), minval=0.5, maxval=1.5)
        scale = gamma / jnp.sqrt(var + eps)
        bias = beta - mean * scale
        return (scale.reshape(c, 1).astype(jnp.float32),
                bias.reshape(c, 1).astype(jnp.float32))

    # conv1 weight (PyTorch: (hidden, n_in, 1, 1)) -> (hidden, n_in)
    w1_pt = 0.3 * jax.random.normal(ks[0], (hidden, n_in, 1, 1))
    w1t = w1_pt[:, :, 0, 0].astype(jnp.float32)
    s1, b1 = folded_bn(ks[1], ks[2], ks[3], ks[4], hidden)

    # conv2 weight (PyTorch: (hidden, hidden, 1, K)) -> (hidden, K*hidden),
    # [h_out, t*hidden + h_in] = w_pt[h_out, h_in, 0, t]  (im2col weight layout)
    w2_pt = 0.3 * jax.random.normal(ks[5], (hidden, hidden, 1, kernel_size))
    w2cat = jnp.transpose(w2_pt[:, :, 0, :], (0, 2, 1)).reshape(
        hidden, kernel_size * hidden).astype(jnp.float32)
    s2, b2 = folded_bn(ks[6], ks[7], ks[8], ks[9], hidden)

    # conv3 weight (PyTorch: (n_out, hidden, 1, 1)) -> (n_out, hidden)
    w3_pt = 0.3 * jax.random.normal(ks[10], (n_out, hidden, 1, 1))
    w3t = w3_pt[:, :, 0, 0].astype(jnp.float32)
    s3, b3 = folded_bn(ks[11], ks[12], ks[13], ks[14], n_out)

    return dict(w1t=w1t, s1=s1, b1=b1, w2cat=w2cat, s2=s2, b2=b2,
                w3t=w3t, s3=s3, b3=b3)


def qinverted_residual_ref(x_nchw, p, dot_dtype=None):
    """Pure-JAX reference.  dot_dtype=None -> module-faithful f32 math; otherwise the
    matmul operands are quantized to dot_dtype (matching the kernel's MXU fast path),
    with accumulation kept in f32."""
    N, Cin, H, W = x_nchw.shape
    hidden = p["w1t"].shape[0]
    Cout = p["w3t"].shape[0]
    K = p["w2cat"].shape[1] // hidden
    pad = (K - 1) // 2
    x = jnp.transpose(x_nchw, (0, 2, 3, 1))  # NHWC, f32

    if dot_dtype is None:
        w1, w2, w3 = p["w1t"], p["w2cat"], p["w3t"]
        s1, s2, s3 = p["s1"][:, 0], p["s2"][:, 0], p["s3"][:, 0]
        cast = lambda a: a
    else:
        w1, _, w2, _, w3, _ = _fold_params(p, dot_dtype)
        s1 = s2 = s3 = 1.0
        cast = lambda a: a.astype(dot_dtype)
    b1, b2, b3 = p["b1"][:, 0], p["b2"][:, 0], p["b3"][:, 0]

    def dot(a, w):
        return jnp.einsum("nhwc,dc->nhwd", cast(a), cast(w),
                          preferred_element_type=jnp.float32)

    y1 = jnp.tanh(dot(x, w1) * s1 + b1)
    y1p = jnp.pad(y1, ((0, 0), (0, 0), (pad, pad), (0, 0)))
    w2r = w2.reshape(hidden, K, hidden)  # [h_out, t, h_in]
    acc = 0.0
    for t in range(K):
        acc = acc + dot(y1p[:, :, t:t + W, :], w2r[:, t, :])
    y2 = jnp.tanh(acc * s2 + b2)
    y3 = dot(y2, w3) * s3 + b3
    out = x + y3 if Cin == Cout else y3   # use_res path (stride==1, Cin==Cout)
    return jnp.transpose(out, (0, 3, 1, 2))


if __name__ == "__main__":
    key = jax.random.PRNGKey(0)
    k_x, k_p = jax.random.split(key)

    # QInvertedResidual(n_in=4, n_out=4, stride=1, expand_ratio=2) -> residual path active.
    n_in = n_out = 4
    expand_ratio = 2
    N, H, W = 2, 64, 16

    x = jax.random.normal(k_x, (N, n_in, H, W), dtype=jnp.float32)
    params = make_params(k_p, n_in, n_out, expand_ratio)

    # (1) f32 MXU operands vs the module-faithful f32 reference (tight tolerance).
    out = jax.block_until_ready(
        qinverted_residual_pallas(x, params, stride=1, dot_dtype=jnp.float32))
    ref = qinverted_residual_ref(x, params)
    assert out.shape == (N, n_out, H, W), out.shape
    assert jnp.allclose(out, ref, atol=1e-4, rtol=1e-4), \
        float(jnp.max(jnp.abs(out - ref)))

    # (2) bf16 MXU operands (native rate on v6e/v7x) vs a matched-precision reference.
    out_bf = jax.block_until_ready(
        qinverted_residual_pallas(x, params, stride=1, dot_dtype=jnp.bfloat16))
    ref_bf = qinverted_residual_ref(x, params, dot_dtype=jnp.bfloat16)
    assert jnp.allclose(out_bf, ref_bf, atol=2e-2, rtol=2e-2), \
        float(jnp.max(jnp.abs(out_bf - ref_bf)))

    print("KERNEL_OK")
</pallas_src>

<mosaic_0001>
module attributes {stable_mosaic.version = 11 : i64} {
  func.func @_qinvres_kernel(%arg0: i32, %arg1: i32, %arg2: memref<1x4x1024xf32, #tpu.memory_space<vmem>>, %arg3: memref<5x512xf32, #tpu.memory_space<vmem>>, %arg4: memref<8x4xf32, #tpu.memory_space<vmem>>, %arg5: memref<8x1xf32, #tpu.memory_space<vmem>>, %arg6: memref<8x40xf32, #tpu.memory_space<vmem>>, %arg7: memref<8x1xf32, #tpu.memory_space<vmem>>, %arg8: memref<4x8xf32, #tpu.memory_space<vmem>>, %arg9: memref<4x1xf32, #tpu.memory_space<vmem>>, %arg10: memref<1x4x1024xf32, #tpu.memory_space<vmem>>, %arg11: memref<40x1024xf32, #tpu.memory_space<vmem>>) attributes {dimension_semantics = [#tpu.dimension_semantics<parallel>, #tpu.dimension_semantics<parallel>], iteration_bounds = array<i64: 2, 1>, scalar_prefetch = 0 : i64, scratch_operands = 1 : i64, tpu.core_type = #tpu.core_type<tc>, window_params = [{transform_indices = @transform_0, window_bounds = array<i64: 1, 4, 1024>}, {pipeline_mode = #tpu.pipeline_mode<synchronous>, transform_indices = @transform_1, window_bounds = array<i64: 5, 512>}, {pipeline_mode = #tpu.pipeline_mode<synchronous>, transform_indices = @transform_2, window_bounds = array<i64: 8, 4>}, {pipeline_mode = #tpu.pipeline_mode<synchronous>, transform_indices = @transform_3, window_bounds = array<i64: 8, 1>}, {pipeline_mode = #tpu.pipeline_mode<synchronous>, transform_indices = @transform_4, window_bounds = array<i64: 8, 40>}, {pipeline_mode = #tpu.pipeline_mode<synchronous>, transform_indices = @transform_5, window_bounds = array<i64: 8, 1>}, {pipeline_mode = #tpu.pipeline_mode<synchronous>, transform_indices = @transform_6, window_bounds = array<i64: 4, 8>}, {pipeline_mode = #tpu.pipeline_mode<synchronous>, transform_indices = @transform_7, window_bounds = array<i64: 4, 1>}, {transform_indices = @transform_8, window_bounds = array<i64: 1, 4, 1024>}]} {
    %c0 = arith.constant 0 : index
    %c0_0 = arith.constant 0 : index
    %0 = vector.load %arg4[%c0, %c0_0] : memref<8x4xf32, #tpu.memory_space<vmem>>, vector<8x4xf32>
    %c0_1 = arith.constant 0 : index
    %c0_2 = arith.constant 0 : index
    %1 = vector.load %arg5[%c0_1, %c0_2] : memref<8x1xf32, #tpu.memory_space<vmem>>, vector<8x1xf32>
    %c0_3 = arith.constant 0 : index
    %c0_4 = arith.constant 0 : index
    %2 = vector.load %arg6[%c0_3, %c0_4] : memref<8x40xf32, #tpu.memory_space<vmem>>, vector<8x40xf32>
    %c0_5 = arith.constant 0 : index
    %c0_6 = arith.constant 0 : index
    %3 = vector.load %arg7[%c0_5, %c0_6] : memref<8x1xf32, #tpu.memory_space<vmem>>, vector<8x1xf32>
    %c0_7 = arith.constant 0 : index
    %c0_8 = arith.constant 0 : index
    %4 = vector.load %arg8[%c0_7, %c0_8] : memref<4x8xf32, #tpu.memory_space<vmem>>, vector<4x8xf32>
    %c0_9 = arith.constant 0 : index
    %c0_10 = arith.constant 0 : index
    %5 = vector.load %arg9[%c0_9, %c0_10] : memref<4x1xf32, #tpu.memory_space<vmem>>, vector<4x1xf32>
    %c0_11 = arith.constant 0 : index
    %c0_12 = arith.constant 0 : index
    %6 = vector.load %arg3[%c0_11, %c0_12] : memref<5x512xf32, #tpu.memory_space<vmem>>, vector<1x512xf32>
    %c1 = arith.constant 1 : index
    %c0_13 = arith.constant 0 : index
    %7 = vector.load %arg3[%c1, %c0_13] : memref<5x512xf32, #tpu.memory_space<vmem>>, vector<1x512xf32>
    %c3 = arith.constant 3 : index
    %c0_14 = arith.constant 0 : index
    %8 = vector.load %arg3[%c3, %c0_14] : memref<5x512xf32, #tpu.memory_space<vmem>>, vector<1x512xf32>
    %c4 = arith.constant 4 : index
    %c0_15 = arith.constant 0 : index
    %9 = vector.load %arg3[%c4, %c0_15] : memref<5x512xf32, #tpu.memory_space<vmem>>, vector<1x512xf32>
    %c0_16 = arith.constant 0 : index
    %c0_17 = arith.constant 0 : index
    %c0_18 = arith.constant 0 : index
    %10 = vector.load %arg2[%c0_16, %c0_17, %c0_18] : memref<1x4x1024xf32, #tpu.memory_space<vmem>>, vector<1x4x512xf32>
    %11 = vector.shape_cast %10 : vector<1x4x512xf32> to vector<4x512xf32>
    %cst = arith.constant dense<0.000000e+00> : vector<8x512xf32>
    %12 = tpu.matmul %0, %11, %cst {dimension_numbers = #tpu.dot_dimension_numbers<[1], [0], [0], [1], [0, 0, 1, 1], [], []>} : vector<8x4xf32>, vector<4x512xf32>, vector<8x512xf32> -> vector<8x512xf32>
    %13 = vector.broadcast %1 : vector<8x1xf32> to vector<8x512xf32>
    %14 = arith.addf %12, %13 : vector<8x512xf32>
    %15 = math.tanh %14 : vector<8x512xf32>
    %c2_i32 = arith.constant 2 : i32
    %16 = tpu.dynamic_rotate %15 by %c2_i32 dim 1 : vector<8x512xf32>, i32 -> vector<8x512xf32>
    %17 = vector.broadcast %6 : vector<1x512xf32> to vector<8x512xf32>
    %18 = arith.mulf %16, %17 : vector<8x512xf32>
    %c0_19 = arith.constant 0 : index
    %c0_20 = arith.constant 0 : index
    %19 = vector.load %arg11[%c0_19, %c0_20] : memref<40x1024xf32, #tpu.memory_space<vmem>>, vector<8x512xf32>
    tpu.vector_store %arg11[%c0_19, %c0_20], %18 {strides = array<i32>} : memref<40x1024xf32, #tpu.memory_space<vmem>>, vector<8x512xf32>,
    %c1_i32 = arith.constant 1 : i32
    %20 = tpu.dynamic_rotate %15 by %c1_i32 dim 1 : vector<8x512xf32>, i32 -> vector<8x512xf32>
    %21 = vector.broadcast %7 : vector<1x512xf32> to vector<8x512xf32>
    %22 = arith.mulf %20, %21 : vector<8x512xf32>
    %c8 = arith.constant 8 : index
    %c0_21 = arith.constant 0 : index
    %23 = vector.load %arg11[%c8, %c0_21] : memref<40x1024xf32, #tpu.memory_space<vmem>>, vector<8x512xf32>
    tpu.vector_store %arg11[%c8, %c0_21], %22 {strides = array<i32>} : memref<40x1024xf32, #tpu.memory_space<vmem>>, vector<8x512xf32>,
    %c16 = arith.constant 16 : index
    %c0_22 = arith.constant 0 : index
    %24 = vector.load %arg11[%c16, %c0_22] : memref<40x1024xf32, #tpu.memory_space<vmem>>, vector<8x512xf32>
    tpu.vector_store %arg11[%c16, %c0_22], %15 {strides = array<i32>} : memref<40x1024xf32, #tpu.memory_space<vmem>>, vector<8x512xf32>,
    %c511_i32 = arith.constant 511 : i32
    %25 = tpu.dynamic_rotate %15 by %c511_i32 dim 1 : vector<8x512xf32>, i32 -> vector<8x512xf32>
    %26 = vector.broadcast %8 : vector<1x512xf32> to vector<8x512xf32>
    %27 = arith.mulf %25, %26 : vector<8x512xf32>
    %c24 = arith.constant 24 : index
    %c0_23 = arith.constant 0 : index
    %28 = vector.load %arg11[%c24, %c0_23] : memref<40x1024xf32, #tpu.memory_space<vmem>>, vector<8x512xf32>
    tpu.vector_store %arg11[%c24, %c0_23], %27 {strides = array<i32>} : memref<40x1024xf32, #tpu.memory_space<vmem>>, vector<8x512xf32>,
    %c510_i32 = arith.constant 510 : i32
    %29 = tpu.dynamic_rotate %15 by %c510_i32 dim 1 : vector<8x512xf32>, i32 -> vector<8x512xf32>
    %30 = vector.broadcast %9 : vector<1x512xf32> to vector<8x512xf32>
    %31 = arith.mulf %29, %30 : vector<8x512xf32>
    %c32 = arith.constant 32 : index
    %c0_24 = arith.constant 0 : index
    %32 = vector.load %arg11[%c32, %c0_24] : memref<40x1024xf32, #tpu.memory_space<vmem>>, vector<8x512xf32>
    tpu.vector_store %arg11[%c32, %c0_24], %31 {strides = array<i32>} : memref<40x1024xf32, #tpu.memory_space<vmem>>, vector<8x512xf32>,
    %c0_25 = arith.constant 0 : index
    %c0_26 = arith.constant 0 : index
    %33 = vector.load %arg11[%c0_25, %c0_26] : memref<40x1024xf32, #tpu.memory_space<vmem>>, vector<40x512xf32>
    %cst_27 = arith.constant dense<0.000000e+00> : vector<8x512xf32>
    %34 = tpu.matmul %2, %33, %cst_27 {dimension_numbers = #tpu.dot_dimension_numbers<[1], [0], [0], [1], [0, 0, 1, 1], [], []>} : vector<8x40xf32>, vector<40x512xf32>, vector<8x512xf32> -> vector<8x512xf32>
    %35 = vector.broadcast %3 : vector<8x1xf32> to vector<8x512xf32>
    %36 = arith.addf %34, %35 : vector<8x512xf32>
    %37 = math.tanh %36 : vector<8x512xf32>
    %cst_28 = arith.constant dense<0.000000e+00> : vector<4x512xf32>
    %38 = tpu.matmul %4, %37, %cst_28 {dimension_numbers = #tpu.dot_dimension_numbers<[1], [0], [0], [1], [0, 0, 1, 1], [], []>} : vector<4x8xf32>, vector<8x512xf32>, vector<4x512xf32> -> vector<4x512xf32>
    %39 = vector.broadcast %5 : vector<4x1xf32> to vector<4x512xf32>
    %40 = arith.addf %38, %39 : vector<4x512xf32>
    %41 = arith.addf %40, %11 : vector<4x512xf32>
    %c0_29 = arith.constant 0 : index
    %c0_30 = arith.constant 0 : index
    %c0_31 = arith.constant 0 : index
    %42 = vector.load %arg10[%c0_29, %c0_30, %c0_31] : memref<1x4x1024xf32, #tpu.memory_space<vmem>>, vector<1x4x512xf32>
    %43 = vector.shape_cast %42 : vector<1x4x512xf32> to vector<4x512xf32>
    %44 = vector.shape_cast %41 : vector<4x512xf32> to vector<1x4x512xf32>
    tpu.vector_store %arg10[%c0_29, %c0_30, %c0_31], %44 {strides = array<i32>} : memref<1x4x1024xf32, #tpu.memory_space<vmem>>, vector<1x4x512xf32>,
    %c0_32 = arith.constant 0 : index
    %c0_33 = arith.constant 0 : index
    %c512 = arith.constant 512 : index
    %45 = vector.load %arg2[%c0_32, %c0_33, %c512] : memref<1x4x1024xf32, #tpu.memory_space<vmem>>, vector<1x4x512xf32>
    %46 = vector.shape_cast %45 : vector<1x4x512xf32> to vector<4x512xf32>
    %cst_34 = arith.constant dense<0.000000e+00> : vector<8x512xf32>
    %47 = tpu.matmul %0, %46, %cst_34 {dimension_numbers = #tpu.dot_dimension_numbers<[1], [0], [0], [1], [0, 0, 1, 1], [], []>} : vector<8x4xf32>, vector<4x512xf32>, vector<8x512xf32> -> vector<8x512xf32>
    %48 = vector.broadcast %1 : vector<8x1xf32> to vector<8x512xf32>
    %49 = arith.addf %47, %48 : vector<8x512xf32>
    %50 = math.tanh %49 : vector<8x512xf32>
    %c2_i32_35 = arith.constant 2 : i32
    %51 = tpu.dynamic_rotate %50 by %c2_i32_35 dim 1 : vector<8x512xf32>, i32 -> vector<8x512xf32>
    %52 = vector.broadcast %6 : vector<1x512xf32> to vector<8x512xf32>
    %53 = arith.mulf %51, %52 : vector<8x512xf32>
    %c0_36 = arith.constant 0 : index
    %c512_37 = arith.constant 512 : index
    %54 = vector.load %arg11[%c0_36, %c512_37] : memref<40x1024xf32, #tpu.memory_space<vmem>>, vector<8x512xf32>
    tpu.vector_store %arg11[%c0_36, %c512_37], %53 {strides = array<i32>} : memref<40x1024xf32, #tpu.memory_space<vmem>>, vector<8x512xf32>,
    %c1_i32_38 = arith.constant 1 : i32
    %55 = tpu.dynamic_rotate %50 by %c1_i32_38 dim 1 : vector<8x512xf32>, i32 -> vector<8x512xf32>
    %56 = vector.broadcast %7 : vector<1x512xf32> to vector<8x512xf32>
    %57 = arith.mulf %55, %56 : vector<8x512xf32>
    %c8_39 = arith.constant 8 : index
    %c512_40 = arith.constant 512 : index
    %58 = vector.load %arg11[%c8_39, %c512_40] : memref<40x1024xf32, #tpu.memory_space<vmem>>, vector<8x512xf32>
    tpu.vector_store %arg11[%c8_39, %c512_40], %57 {strides = array<i32>} : memref<40x1024xf32, #tpu.memory_space<vmem>>, vector<8x512xf32>,
    %c16_41 = arith.constant 16 : index
    %c512_42 = arith.constant 512 : index
    %59 = vector.load %arg11[%c16_41, %c512_42] : memref<40x1024xf32, #tpu.memory_space<vmem>>, vector<8x512xf32>
    tpu.vector_store %arg11[%c16_41, %c512_42], %50 {strides = array<i32>} : memref<40x1024xf32, #tpu.memory_space<vmem>>, vector<8x512xf32>,
    %c511_i32_43 = arith.constant 511 : i32
    %60 = tpu.dynamic_rotate %50 by %c511_i32_43 dim 1 : vector<8x512xf32>, i32 -> vector<8x512xf32>
    %61 = vector.broadcast %8 : vector<1x512xf32> to vector<8x512xf32>
    %62 = arith.mulf %60, %61 : vector<8x512xf32>
    %c24_44 = arith.constant 24 : index
    %c512_45 = arith.constant 512 : index
    %63 = vector.load %arg11[%c24_44, %c512_45] : memref<40x1024xf32, #tpu.memory_space<vmem>>, vector<8x512xf32>
    tpu.vector_store %arg11[%c24_44, %c512_45], %62 {strides = array<i32>} : memref<40x1024xf32, #tpu.memory_space<vmem>>, vector<8x512xf32>,
    %c510_i32_46 = arith.constant 510 : i32
    %64 = tpu.dynamic_rotate %50 by %c510_i32_46 dim 1 : vector<8x512xf32>, i32 -> vector<8x512xf32>
    %65 = vector.broadcast %9 : vector<1x512xf32> to vector<8x512xf32>
    %66 = arith.mulf %64, %65 : vector<8x512xf32>
    %c32_47 = arith.constant 32 : index
    %c512_48 = arith.constant 512 : index
    %67 = vector.load %arg11[%c32_47, %c512_48] : memref<40x1024xf32, #tpu.memory_space<vmem>>, vector<8x512xf32>
    tpu.vector_store %arg11[%c32_47, %c512_48], %66 {strides = array<i32>} : memref<40x1024xf32, #tpu.memory_space<vmem>>, vector<8x512xf32>,
    %c0_49 = arith.constant 0 : index
    %c512_50 = arith.constant 512 : index
    %68 = vector.load %arg11[%c0_49, %c512_50] : memref<40x1024xf32, #tpu.memory_space<vmem>>, vector<40x512xf32>
    %cst_51 = arith.constant dense<0.000000e+00> : vector<8x512xf32>
    %69 = tpu.matmul %2, %68, %cst_51 {dimension_numbers = #tpu.dot_dimension_numbers<[1], [0], [0], [1], [0, 0, 1, 1], [], []>} : vector<8x40xf32>, vector<40x512xf32>, vector<8x512xf32> -> vector<8x512xf32>
    %70 = vector.broadcast %3 : vector<8x1xf32> to vector<8x512xf32>
    %71 = arith.addf %69, %70 : vector<8x512xf32>
    %72 = math.tanh %71 : vector<8x512xf32>
    %cst_52 = arith.constant dense<0.000000e+00> : vector<4x512xf32>
    %73 = tpu.matmul %4, %72, %cst_52 {dimension_numbers = #tpu.dot_dimension_numbers<[1], [0], [0], [1], [0, 0, 1, 1], [], []>} : vector<4x8xf32>, vector<8x512xf32>, vector<4x512xf32> -> vector<4x512xf32>
    %74 = vector.broadcast %5 : vector<4x1xf32> to vector<4x512xf32>
    %75 = arith.addf %73, %74 : vector<4x512xf32>
    %76 = arith.addf %75, %46 : vector<4x512xf32>
    %c0_53 = arith.constant 0 : index
    %c0_54 = arith.constant 0 : index
    %c512_55 = arith.constant 512 : index
    %77 = vector.load %arg10[%c0_53, %c0_54, %c512_55] : memref<1x4x1024xf32, #tpu.memory_space<vmem>>, vector<1x4x512xf32>
    %78 = vector.shape_cast %77 : vector<1x4x512xf32> to vector<4x512xf32>
    %79 = vector.shape_cast %76 : vector<4x512xf32> to vector<1x4x512xf32>
    tpu.vector_store %arg10[%c0_53, %c0_54, %c512_55], %79 {strides = array<i32>} : memref<1x4x1024xf32, #tpu.memory_space<vmem>>, vector<1x4x512xf32>,
    return
  }
  func.func @transform_0(%arg0: i32, %arg1: i32) -> (i32, i32, i32) {
    %c0_i32 = arith.constant 0 : i32
    %c0_i32_0 = arith.constant 0 : i32
    return %arg0, %c0_i32, %arg1 : i32, i32, i32
  }
  func.func @transform_1(%arg0: i32, %arg1: i32) -> (i32, i32) {
    %c0_i32 = arith.constant 0 : i32
    %c0_i32_0 = arith.constant 0 : i32
    %c0_i32_1 = arith.constant 0 : i32
    return %c0_i32, %c0_i32_0 : i32, i32
  }
  func.func @transform_2(%arg0: i32, %arg1: i32) -> (i32, i32) {
    %c0_i32 = arith.constant 0 : i32
    %c0_i32_0 = arith.constant 0 : i32
    %c0_i32_1 = arith.constant 0 : i32
    return %c0_i32, %c0_i32_0 : i32, i32
  }
  func.func @transform_3(%arg0: i32, %arg1: i32) -> (i32, i32) {
    %c0_i32 = arith.constant 0 : i32
    %c0_i32_0 = arith.constant 0 : i32
    %c0_i32_1 = arith.constant 0 : i32
    return %c0_i32, %c0_i32_0 : i32, i32
  }
  func.func @transform_4(%arg0: i32, %arg1: i32) -> (i32, i32) {
    %c0_i32 = arith.constant 0 : i32
    %c0_i32_0 = arith.constant 0 : i32
    %c0_i32_1 = arith.constant 0 : i32
    return %c0_i32, %c0_i32_0 : i32, i32
  }
  func.func @transform_5(%arg0: i32, %arg1: i32) -> (i32, i32) {
    %c0_i32 = arith.constant 0 : i32
    %c0_i32_0 = arith.constant 0 : i32
    %c0_i32_1 = arith.constant 0 : i32
    return %c0_i32, %c0_i32_0 : i32, i32
  }
  func.func @transform_6(%arg0: i32, %arg1: i32) -> (i32, i32) {
    %c0_i32 = arith.constant 0 : i32
    %c0_i32_0 = arith.constant 0 : i32
    %c0_i32_1 = arith.constant 0 : i32
    return %c0_i32, %c0_i32_0 : i32, i32
  }
  func.func @transform_7(%arg0: i32, %arg1: i32) -> (i32, i32) {
    %c0_i32 = arith.constant 0 : i32
    %c0_i32_0 = arith.constant 0 : i32
    %c0_i32_1 = arith.constant 0 : i32
    return %c0_i32, %c0_i32_0 : i32, i32
  }
  func.func @transform_8(%arg0: i32, %arg1: i32) -> (i32, i32, i32) {
    %c0_i32 = arith.constant 0 : i32
    %c0_i32_0 = arith.constant 0 : i32
    return %arg0, %c0_i32, %arg1 : i32, i32, i32
  }
}

</mosaic_0001>

<bundles_post_ra>
// kernel: tpu_custom_call.1
= control target key start
LH: loop header
LB: loop body
LE: loop exit
PB: predicated region body
PF: predicated region fallthrough
CT: control target
= control target key end

     0   :  { %13 = vsyncpa [#allocation4], 0  ;;  %s2642_s0 = inlined_call_operand.hbm [shape: f32[2,4,1024], index: 0, kind: input, shape index: {}]   ;;  %s2643_s1 = inlined_call_operand.vmem [shape: f32[5,512], index: 1, kind: input, shape index: {}]   ;;  %s2644_s2 = inlined_call_operand.vmem [shape: f32[8,4], index: 2, kind: input, shape index: {}]   ;;  %s2645_s3 = inlined_call_operand.vmem [shape: f32[8,1], index: 3, kind: input, shape index: {}]   ;;  %s2646_s4 = inlined_call_operand.vmem [shape: f32[8,40], index: 4, kind: input, shape index: {}]   ;;  %s2647_s5 = inlined_call_operand.vmem [shape: f32[8,1], index: 5, kind: input, shape index: {}]   ;;  %s2648_s6 = inlined_call_operand.vmem [shape: f32[4,8], index: 6, kind: input, shape index: {}]   ;;  %s2649_s7 = inlined_call_operand.vmem [shape: f32[4,1], index: 7, kind: input, shape index: {}]   ;;  %s2650_s8 = inlined_call_operand.hbm [shape: f32[2,4,1024], index: 8, kind: output, shape index: {}]  }
   0x1   :  { %15 = vsyncpa [#allocation4 + $0x1], 0 }
   0x2   :  { %16 = vsyncpa [#allocation5], 0 }
   0x3   :  { %18 = vsyncpa [#allocation5 + $0x1], 0  ;;  %s2055_s27 = smov 0   ;;  %s2057_s28 = smov 0  }
   0x4   :  { %s2059_s29 = smov 0   ;;  %s2061_s30 = smov 0  }
   0x5   :  { %s2063_s9 = smov 0   ;;  %s2065_s10 = smov 0  }
   0x6 LB: > { %s1710_s11 = sadd.s32 4294967295, %s2000_s10   ;;  %s1711_s12 = sadd.s32 4294967294, %s2000_s10   ;;  %s2000_s10 = sphi %s2065_s10, %s24_s10   ;;  %s1996_s9 = sphi %s2063_s9, %s2666_s9   ;;  %s1992_s30 = sphi %s2061_s30, %s2665_s30   ;;  %s1988_s29 = sphi %s2059_s29, %s2664_s29   ;;  %s1984_s28 = sphi %s2057_s28, %s2663_s28   ;;  %s1980_s27 = sphi %s2055_s27, %s2662_s27  }
   0x7   : > { %s36_s13 = sadd.s32 1, %s1996_s9  ;;  %s45_s14 = sadd.s32 1, %s1988_s29 }
   0x8   : > { %p38_p0 = scmp.ge.s32.totalorder %s36_s13, 2  ;;  %p52_p1 = scmp.ne.s32.totalorder %s1988_s29, %s1984_s28 }
   0x9   : > { %p53_p2 = scmp.eq.s32.totalorder %s2000_s10, 0  ;;  %p58_p3 = scmp.ne.s32.totalorder %s1984_s28, %s1980_s27 }
   0xa   : > { %s2668_s13 = smov (%p38_p0, %s36_s13), 0  ;;  %p59_p5 = scmp.eq.s32.totalorder %s1710_s11, 0 }
   0xb   : > { %p2096_p4 = por %p53_p2, %p52_p1  ;;  %s40_s16 = ssub.s32 %s1996_s9, %s2668_s13 }
   0xc   : > { %p231_p6 = scmp.eq.s32.totalorder %s1710_s11, 1  ;;  %p43_p7 = scmp.eq.s32.totalorder %s40_s16, 0 }
   0xd   : > { %p2102_p8 = por %p59_p5, %p58_p3  ;;  %p237_p10 = scmp.eq.s32.totalorder %s1711_s12, 1 }
   0xe   : > { %p2106_p9 = por %p231_p6, %p52_p1  ;;  %p1794_p13 = scmp.lt.s32.totalorder %s2000_s10, 2 }
   0xf   : > { %s2111_s19 = scalar_select %p43_p7, %s1988_s29, %s45_s14  }
  0x10   : > { %s2654_s18 = scalar_select %p2106_p9, 1, 0 }
  0x11   : > { %p2113_p11 = por %p237_p10, %p58_p3  ;;  %s278_s21 = sand.u32 1, %s1988_s29  }
  0x12   : > { %s1714_s22 = sshll.u32 %s278_s21, 5  ;;  %s1748_s23 = sshll.u32 %s1996_s9, 9 }
  0x13   : > { %s2655_s20 = scalar_select %p2113_p11, 1, 0 }
  0x14   : > { %s2124_s26 = scalar_lea.hbm %s2642_s0, %s1748_s23  ;;  %s282_s11 = scalar_lea.vmem [#allocation3], %s1714_s22 }
  0x15   : > { %s292_s12 = sshll.u32 %s282_s11, 4  ;;  %p2130_p0 = pnand %p1794_p13, %p2096_p4  ;;  %s2126_s12 = int_to_ptr.vmem [resolvable:$true] %s292_s12 }
  0x16   : > { %s279_s16 = scalar_lea.sflag [#allocation4], %s278_s21  ;;  %s1888_s23 = scalar_lea.hbm %s2124_s26, 512 }
  0x17   : > { %p1889_p3 = scmp.ne.s32.totalorder %s2124_s26, %s1888_s23  ;;  %p1890_p5 = pneg %p2130_p0 }
  0x18   : > { %s1893_s15 = scalar_lea.hbm %s2642_s0, 1024  ;;  %p1894_p4 = scmp.lt.u32.totalorder %s2124_s26, %s2642_s0 }
  0x19   : > { %p1891_p6 = pnand %p1890_p5, %p1889_p3  ;;  %p1895_p10 = scmp.lt.u32.totalorder %s1893_s15, %s1888_s23 }
  0x1a   : > { %p1897_p12 = scmp.lt.u32.totalorder %s1888_s23, %s2124_s26 }
  0x1b   : > { %p1892_p7 = pneg %p1891_p6  ;;  %p1896_p13 = por %p1895_p10, %p1894_p4 }
  0x1d   : > { %p1898_p1 = por %p1897_p12, %p1896_p13 }
  0x1f   : > { %p1899_p2 = pnand %p1898_p1, %p1892_p7 }
  0x21   : > { %1902 = shalt.err (!%p1899_p2)
}
  0x22   : > { %s1903_s21 = scalar_lea.vmem %s2126_s12, 512  ;;  %s2002_s22 = smov [#allocation3]  }
  0x23   : > { %p1904_p3 = scmp.ne.s32.totalorder %s2126_s12, %s1903_s21  ;;  %s1908_s24 = sshll.u32 %s2002_s22, 4  ;;  %s1909_s24 = int_to_ptr.vmem [resolvable:$false] %s1908_s24 }
  0x24   : > { %s1910_s25 = scalar_lea.vmem %s1909_s24, 1024  ;;  %p1911_p9 = scmp.lt.s32.totalorder %s2126_s12, %s1909_s24 }
  0x25   : > { %p1906_p6 = pnand %p1904_p3, %p1890_p5  ;;  %p1912_p4 = scmp.lt.s32.totalorder %s1910_s25, %s1903_s21 }
  0x27   : > { %p1907_p11 = pneg %p1906_p6  ;;  %p1913_p10 = por %p1912_p4, %p1911_p9 }
  0x29   : > { %p1914_p12 = pnand %p1913_p10, %p1907_p11 }
  0x2b   : > { %1917 = shalt.err (!%p1914_p12)
}
  0x2c   : > { %1789 = dma.hbm_to_vmem [thread:$0]  (!%p2130_p0), %s2124_s26, 512, %s2126_s12, %s279_s16  }
  0x2d   : > { %p2657_p1 = scmp.lt.s32.totalorder %s2000_s10, 3  ;;  %p2658_p2 = scmp.ge.s32.totalorder %s2000_s10, 1 }
  0x2f   : > { %p298_p5 = pnand %p2658_p2, %p2657_p1 }
  0x30   : > { %s2166_s23 = sand.u32 (!%p298_p5), 1, %s1984_s28  }
  0x31   : > { %301 = sbr.rel (%p298_p5) target bundleno = 1504 (0x5e0), region = 52  ;;  %s1718_s15 = sshll.u32 (!%p298_p5), %s2166_s23, 5 }
  0x32   : > { %s304_s11 = scalar_lea.sflag (!%p298_p5), [#allocation4], %s2166_s23  ;;  %s2172_s14 = scalar_lea.vmem (!%p298_p5), [#allocation3], %s1718_s15 }
  0x38   : > { %1971 = dma.done.wait (%p2102_p8), %s304_s11, 512  }
  0x39   : > { %1973 = vsyncadd (%p2102_p8), %s304_s11, 4294966784  ;;  %v2003_v0 = vmov 0.0   ;;  %v2004_v1 = vmov 0   ;;  %v2181_v2 = vld [vmem:[%s2172_s14] sm:$0xff]  ;;  %vm370_vm0 = vcmask 1043456   ;;  %v2184_v3 = vld [vmem:[%s2172_s14 + $0x8] sm:$0xff]  ;;  %v533_v22 = vlaneseq }
  0x3a   : > { %443 = vmatprep.mubr.f32.mxu0 %v2003_v0  ;;  %514 = vmatprep.mubr.f32.mxu1 %v2003_v0  ;;  %v2188_v4 = vcombine.high %v2181_v2, %v2181_v2  ;;  %v2192_v5 = vcombine.high %v2184_v3, %v2184_v3  ;;  %v343_v6 = vld [vmem:[%s2645_s3] sm:$0xff]  ;;  %vm366_vm1 = vcmask 31744   ;;  %s2005_s21 = smov 2   ;;  %s2006_s22 = smov 1   ;;  %vm724_vm6 = vcmask 326656  }
  0x3b   : > { %1850 = vset.pattern.permute.xlu0 %v2004_v1  ;;  %1851 = vset.pattern.permute.xlu1 %v2004_v1  ;;  %v2200_v7 = vld [vmem:[%s2644_s2] sm:$0xff]  ;;  %s2007_s24 = smov 127   ;;  %s2008_s25 = smov 126   ;;  %v542_v25 = vshrl.u32 %v533_v22, 7  ;;  %v2265_v26 = vand.u32 127, %v533_v22  ;;  %vm879_vm7 = vcmask 64512  }
  0x3c   : > { %359 = vperm.xlu0 %1850, %v343_v6   ;;  %1723 = vmatprep.subr.msk.mxu0 %vm370_vm0, %v2188_v4  ;;  %v345_v21 = vld [vmem:[%s2647_s5] sm:$0xff]  ;;  %s1610_s17 = scalar_lea.sflag [#allocation5], %s2166_s23  ;;  %p2659_p9 = scmp.ne.s32.totalorder %s2654_s18, 0 }
  0x3d   : > { %1726 = vmatprep.subr.msk.mxu1 %vm370_vm0, %v2192_v5  ;;  %1724 = vmatpush1.msk.msra.mxu0 %vm370_vm0, %v2181_v2  ;;  %v2267_v29 = vsub.s32 3, %v542_v25  ;;  %v348_v30 = vld [vmem:[%s2643_s1] ss:$8 sm:$0xf]  ;;  %vm535_vm2 = vcmp.lt.s32.totalorder %v2265_v26, 2  ;;  %v2273_v32 = vsub.s32 0, %v542_v25 }
  0x3e   : > { %1727 = vmatpush1.msk.msra.mxu1 %vm370_vm0, %v2184_v3  ;;  %1725 = vmatmul.mubr.msk.f32.vlgmr.msra.gmra.mrb[0].mxu0 %vm366_vm1, %v2200_v7  ;;  %v1720_v34 = vld [vmem:[%s2643_s1 + $0x1] ss:$8 sm:$0xf]  ;;  %v2278_v35 = vsub.s32 1, %v542_v25  ;;  %v2283_v37 = vsub.s32 2, %v542_v25  ;;  %vm577_vm3 = vcmp.lt.s32.totalorder %v2265_v26, 1 }
  0x3f   : > { %1728 = vmatmul.mubr.msk.f32.vlgmr.msra.gmra.mrb[0].mxu1 %vm366_vm1, %v2200_v7  ;;  %792 = vmatprep.mubr.f32.mxu0 %v2003_v0  ;;  %v2281_v36 = vrot.slane %v348_v30, %v2267_v29  ;;  %v2286_v38 = vrot.slane %v1720_v34, %v2267_v29  ;;  %v2292_v41 = vrot.slane %v348_v30, %v2273_v32  ;;  %v1721_v46 = vld [vmem:[%s2643_s1 + $0x3] ss:$8 sm:$0xf]  ;;  %vm623_vm4 = vcmp.lt.s32.totalorder %v2265_v26, 127 }
  0x40   : > { %863 = vmatprep.mubr.f32.mxu1 %v2003_v0  ;;  %v2295_v42 = vrot.slane %v1720_v34, %v2278_v35  ;;  %v2298_v44 = vrot.slane %v1720_v34, %v2273_v32  ;;  %v2307_v48 = vrot.slane %v1720_v34, %v2283_v37  ;;  %v2317_v53 = vrot.slane %v348_v30, %v2278_v35 }
  0x41   : > { %v2320_v54 = vrot.slane %v348_v30, %v2283_v37  ;;  %v2326_v56 = vrot.slane %v1721_v46, %v2273_v32  ;;  %v2330_v61 = vrot.slane %v1721_v46, %v2278_v35  ;;  %v2333_v62 = vrot.slane %v1721_v46, %v2283_v37 }
  0x42   : > { %v2336_v63 = vrot.slane %v1721_v46, %v2267_v29  ;;  %vm665_vm5 = vcmp.lt.s32.totalorder %v2265_v26, 126 }
  0xbb   : > { %v2216_v8 = vpop.permute.xlu0 %359 }
 0x111   : > { %v445_v9 = vpop.f32.mrb[0].mxu0 }
 0x112   : > { %v516_v10 = vpop.f32.mrb[0].mxu1  ;;  %v446_v11 = vadd.f32 %v445_v9, %v2216_v8  ;;  %v447_v13 = vpop.f32.mrb[1].mxu0 }
 0x113   : > { %v517_v12 = vadd.f32 %v516_v10, %v2216_v8  ;;  %v518_v14 = vpop.f32.mrb[1].mxu1  ;;  %v448_v16 = vadd.f32 %v447_v13, %v2216_v8 }
 0x114   : > { %1856 = vtanh.f32 %v446_v11  ;;  %v519_v15 = vadd.f32 %v518_v14, %v2216_v8 }
 0x115   : > { %1858 = vtanh.f32 %v517_v12 }
 0x116   : > { %1860 = vtanh.f32 %v519_v15 }
 0x117   : > { %1862 = vtanh.f32 %v448_v16 }
 0x11e   : > { %v2222_v17 = vpop.eup %1856 }
 0x11f   : > { %v2224_v18 = vpop.eup %1858  ;;  %525 = vrot.lane.b32.xlu0 %v2222_v17, %s2005_s21 }
 0x120   : > { %529 = vrot.lane.b32.xlu1 %v2224_v18, %s2005_s21  ;;  %v2230_v19 = vpop.eup %1860 }
 0x121   : > { %v2236_v20 = vpop.eup %1862 }
 0x123   : > { %531 = vrot.lane.b32.xlu0 %v2230_v19, %s2005_s21 }
 0x124   : > { %569 = vrot.lane.b32.xlu1 %v2222_v17, %s2006_s22 }
 0x127   : > { %571 = vrot.lane.b32.xlu0 %v2236_v20, %s2006_s22 }
 0x128   : > { %573 = vrot.lane.b32.xlu1 %v2224_v18, %s2006_s22 }
 0x12b   : > { %575 = vrot.lane.b32.xlu0 %v2230_v19, %s2006_s22 }
 0x12c   : > { %615 = vrot.lane.b32.xlu1 %v2222_v17, %s2007_s24 }
 0x12f   : > { %617 = vrot.lane.b32.xlu0 %v2236_v20, %s2007_s24 }
 0x130   : > { %527 = vrot.lane.b32.xlu1 %v2236_v20, %s2005_s21 }
 0x133   : > { %621 = vrot.lane.b32.xlu0 %v2230_v19, %s2007_s24 }
 0x134   : > { %619 = vrot.lane.b32.xlu1 %v2224_v18, %s2007_s24 }
 0x137   : > { %659 = vrot.lane.b32.xlu0 %v2236_v20, %s2008_s25 }
 0x138   : > { %657 = vrot.lane.b32.xlu1 %v2222_v17, %s2008_s25 }
 0x13b   : > { %663 = vrot.lane.b32.xlu0 %v2230_v19, %s2008_s25 }
 0x13c   : > { %661 = vrot.lane.b32.xlu1 %v2224_v18, %s2008_s25 }
 0x140   : > { %721 = vperm.xlu1 %1851, %v345_v21  }
 0x191   : > { %v526_v23 = vpop.permute.xlu0 %525 }
 0x192   : > { %v530_v24 = vpop.permute.xlu1 %529 }
 0x195   : > { %v532_v27 = vpop.permute.xlu0 %531 }
 0x196   : > { %v570_v28 = vpop.permute.xlu1 %569  ;;  %v536_v39 = vsel %vm535_vm2, %v530_v24, %v532_v27  ;;  %v539_v51 = vsel %vm535_vm2, %v532_v27, %v526_v23 }
 0x197   : > { %v564_v47 = vmul.f32 %v2281_v36, %v536_v39  ;;  %v561_v1 = vmul.f32 %v2292_v41, %v539_v51 }
 0x199   : > { %v572_v31 = vpop.permute.xlu0 %571 }
 0x19a   : > { %v574_v33 = vpop.permute.xlu1 %573  ;;  %v580_v52 = vsel %vm577_vm3, %v570_v28, %v572_v31 }
 0x19b   : > { %v579_v55 = vsel %vm577_vm3, %v572_v31, %v574_v33  ;;  %v604_v6 = vmul.f32 %v2295_v42, %v580_v52 }
 0x19c   : > { %v605_v11 = vmul.f32 %v2307_v48, %v579_v55 }
 0x19d   : > { %v576_v40 = vpop.permute.xlu0 %575 }
 0x19e   : > { %v616_v43 = vpop.permute.xlu1 %615  ;;  %v578_v45 = vsel %vm577_vm3, %v574_v33, %v576_v40  ;;  %v581_v49 = vsel %vm577_vm3, %v576_v40, %v570_v28 }
 0x19f   : > { %v606_v50 = vmul.f32 %v2286_v38, %v578_v45  ;;  %v603_v59 = vmul.f32 %v2298_v44, %v581_v49  ;;  %v1722_v45 = vld [vmem:[%s2643_s1 + $0x4] ss:$8 sm:$0xf] }
 0x1a0   : > { %v2368_v49 = vrot.slane %v1722_v45, %v2267_v29 }
 0x1a1   : > { %v618_v57 = vpop.permute.xlu0 %617  ;;  %v1758_v58 = vpack.c.bf16 %v606_v50, %v564_v47  ;;  %v1752_v16 = vpack.c.bf16 %v603_v59, %v561_v1  ;;  %v2377_v50 = vrot.slane %v1722_v45, %v2273_v32 }
 0x1a2   : > { %v528_v60 = vpop.permute.xlu1 %527  ;;  %v626_v14 = vsel %vm623_vm4, %v616_v43, %v618_v57 }
 0x1a3   : > { %v537_v9 = vsel %vm535_vm2, %v528_v60, %v530_v24  ;;  %v538_v10 = vsel %vm535_vm2, %v526_v23, %v528_v60  ;;  %1759 = vmatprep.subr.bf16.mxu1 %v1758_v58  ;;  %v649_v23 = vmul.f32 %v2326_v56, %v626_v14  ;;  %v2409_v14 = vld [vmem:[%s2172_s14 + $0x10] sm:$0xff] }
 0x1a4   : > { %v562_v12 = vmul.f32 %v2317_v53, %v538_v10  ;;  %v563_v13 = vmul.f32 %v2320_v54, %v537_v9 }
 0x1a5   : > { %v622_v15 = vpop.permute.xlu0 %621  ;;  %v1756_v47 = vpack.c.bf16 %v649_v23, %v2222_v17 }
 0x1a6   : > { %v1760_v21 = vpack.c.bf16 %v605_v11, %v563_v13  ;;  %v620_v22 = vpop.permute.xlu1 %619  ;;  %v627_v24 = vsel %vm623_vm4, %v622_v15, %v616_v43  ;;  %v1750_v25 = vpack.c.bf16 %v604_v6, %v562_v12 }
 0x1a7   : > { %v625_v27 = vsel %vm623_vm4, %v618_v57, %v620_v22  ;;  %v624_v28 = vsel %vm623_vm4, %v620_v22, %v622_v15  ;;  %v652_v30 = vmul.f32 %v2336_v63, %v627_v24  ;;  %v2393_v57 = vld [vmem:[%s2646_s4] sm:$0xff] }
 0x1a8   : > { %v650_v31 = vmul.f32 %v2330_v61, %v625_v27  ;;  %v651_v33 = vmul.f32 %v2333_v62, %v624_v28  ;;  %1751 = vmatprep.subr.bf16.mxu0 %v1750_v25  ;;  %1761 = vmatpush1.bf16.msra.mxu1 %v1760_v21  ;;  %v2417_v24 = vld [vmem:[%s2648_s6] sm:$0xf]  ;;  %v2421_v25 = vcombine.high %v2409_v14, %v2409_v14 }
 0x1a9   : > { %1753 = vmatpush1.bf16.msra.mxu0 %v1752_v16  ;;  %v660_v34 = vpop.permute.xlu0 %659  ;;  %v1762_v39 = vpack.c.bf16 %v652_v30, %v2230_v19  ;;  %v2371_v19 = vrot.slane %v1722_v45, %v2278_v35  ;;  %v2412_v16 = vld [vmem:[%s2172_s14 + $0x18] sm:$0xff] }
 0x1aa   : > { %v1764_v40 = vpack.c.bf16 %v651_v33, %v2224_v18  ;;  %v658_v43 = vpop.permute.xlu1 %657  ;;  %v1754_v46 = vpack.c.bf16 %v650_v31, %v2236_v20  ;;  %v2374_v18 = vrot.slane %v1722_v45, %v2283_v37  ;;  %v2425_v27 = vcombine.high %v2412_v16, %v2412_v16 }
 0x1ab   : > { %1763 = vmatprep.subr.bf16.mxu1 %v1762_v39  ;;  %v668_v17 = vsel %vm665_vm5, %v658_v43, %v660_v34 }
 0x1ac   : > { %1755 = vmatprep.subr.bf16.mxu0 %v1754_v46  ;;  %1765 = vmatpush1.bf16.msra.mxu1 %v1764_v40  ;;  %v691_v58 = vmul.f32 %v2377_v50, %v668_v17 }
 0x1ad   : > { %1757 = vmatpush1.bf16.msra.mxu0 %v1756_v47  ;;  %v664_v20 = vpop.permute.xlu0 %663 }
 0x1ae   : > { %v662_v51 = vpop.permute.xlu1 %661  ;;  %v669_v29 = vsel %vm665_vm5, %v664_v20, %v658_v43 }
 0x1af   : > { %v667_v52 = vsel %vm665_vm5, %v660_v34, %v662_v51  ;;  %v666_v35 = vsel %vm665_vm5, %v662_v51, %v664_v20  ;;  %v694_v37 = vmul.f32 %v2368_v49, %v669_v29 }
 0x1b0   : > { %v692_v32 = vmul.f32 %v2371_v19, %v667_v52  ;;  %v693_v55 = vmul.f32 %v2374_v18, %v666_v35 }
 0x1b1   : > { %807 = vmatprep.subr.mxu1 %v694_v37 }
 0x1b2   : > { %736 = vmatprep.subr.mxu0 %v692_v32  ;;  %808 = vmatpush1.msra.mxu1 %v693_v55 }
 0x1b3   : > { %737 = vmatpush1.msra.mxu0 %v691_v58  ;;  %1730 = vmatmul.mubr.msk.f32.vlgmr.msra.gmra.mrb[2].mxu1 %vm724_vm6, %v2393_v57 }
 0x1b4   : > { %1729 = vmatmul.mubr.msk.f32.vlgmr.msra.gmra.mrb[2].mxu0 %vm724_vm6, %v2393_v57  ;;  %1018 = vmatprep.mubr.f32.mxu1 %v2003_v0 }
 0x1b5   : > { %947 = vmatprep.mubr.f32.mxu0 %v2003_v0 }
 0x1bf   : > { %v2402_v59 = vpop.permute.xlu1 %721 }
 0x286   : > { %v865_v60 = vpop.f32.mrb[2].mxu1 }
 0x287   : > { %v794_v1 = vpop.f32.mrb[2].mxu0  ;;  %v866_v6 = vadd.f32 %v865_v60, %v2402_v59  ;;  %v867_v9 = vpop.f32.mrb[3].mxu1 }
 0x288   : > { %v795_v10 = vadd.f32 %v794_v1, %v2402_v59  ;;  %v796_v11 = vpop.f32.mrb[3].mxu0  ;;  %v868_v12 = vadd.f32 %v867_v9, %v2402_v59 }
 0x289   : > { %1864 = vtanh.f32 %v866_v6  ;;  %v797_v13 = vadd.f32 %v796_v11, %v2402_v59 }
 0x28a   : > { %1866 = vtanh.f32 %v795_v10 }
 0x28b   : > { %1868 = vtanh.f32 %v797_v13 }
 0x28c   : > { %1870 = vtanh.f32 %v868_v12 }
 0x293   : > { %v1865_v15 = vpop.eup %1864 }
 0x294   : > { %v1867_v21 = vpop.eup %1866 }
 0x295   : > { %v1869_v22 = vpop.eup %1868 }
 0x296   : > { %v1871_v23 = vpop.eup %1870  ;;  %883 = vmatprep.subr.mxu0 %v1869_v22 }
 0x297   : > { %954 = vmatprep.subr.mxu1 %v1871_v23  ;;  %884 = vmatpush1.msra.mxu0 %v1867_v21 }
 0x298   : > { %955 = vmatpush1.msra.mxu1 %v1865_v15  ;;  %1731 = vmatmul.mubr.msk.f32.vlgmr.msra.gmra.mrb[4].mxu0 %vm879_vm7, %v2417_v24 }
 0x299   : > { %1732 = vmatmul.mubr.msk.f32.vlgmr.msra.gmra.mrb[4].mxu1 %vm879_vm7, %v2417_v24  ;;  %1733 = vmatprep.subr.msk.mxu0 %vm370_vm0, %v2421_v25 }
 0x29a   : > { %1736 = vmatprep.subr.msk.mxu1 %vm370_vm0, %v2425_v27  ;;  %1734 = vmatpush1.msk.msra.mxu0 %vm370_vm0, %v2409_v14 }
 0x29b   : > { %1119 = vmatprep.mubr.f32.mxu0 %v2003_v0  ;;  %1737 = vmatpush1.msk.msra.mxu1 %vm370_vm0, %v2412_v16 }
 0x29c   : > { %1190 = vmatprep.mubr.f32.mxu1 %v2003_v0  ;;  %1735 = vmatmul.mubr.msk.f32.vlgmr.msra.gmra.mrb[6].mxu0 %vm366_vm1, %v2200_v7 }
 0x29d   : > { %1738 = vmatmul.mubr.msk.f32.vlgmr.msra.gmra.mrb[6].mxu1 %vm366_vm1, %v2200_v7  ;;  %1369 = vmatprep.mubr.f32.mxu0 %v2003_v0 }
 0x29e   : > { %1440 = vmatprep.mubr.f32.mxu1 %v2003_v0 }
 0x36b   : > { %v2447_v28 = vpop.f32.mrb[4].mxu0 }
 0x36c   : > { %v2449_v30 = vpop.f32.mrb[5].mxu0  ;;  %v2451_v31 = vpop.f32.mrb[4].mxu1 }
 0x36d   : > { %v2453_v33 = vpop.f32.mrb[5].mxu1 }
 0x36f   : > { %v1121_v34 = vpop.f32.mrb[6].mxu0 }
 0x370   : > { %v1122_v39 = vadd.f32 %v1121_v34, %v2216_v8  ;;  %v1192_v40 = vpop.f32.mrb[6].mxu1  ;;  %v1123_v43 = vpop.f32.mrb[7].mxu0 }
 0x371   : > { %v1124_v45 = vadd.f32 %v1123_v43, %v2216_v8  ;;  %v1194_v7 = vpop.f32.mrb[7].mxu1  ;;  %v1193_v46 = vadd.f32 %v1192_v40, %v2216_v8 }
 0x372   : > { %1872 = vtanh.f32 %v1122_v39  ;;  %v1195_v47 = vadd.f32 %v1194_v7, %v2216_v8  ;;  %v347_v8 = vld [vmem:[%s2649_s7] sm:$0xf] }
 0x373   : > { %1874 = vtanh.f32 %v1124_v45 }
 0x374   : > { %1876 = vtanh.f32 %v1193_v46 }
 0x375   : > { %1878 = vtanh.f32 %v1195_v47 }
 0x37c   : > { %v2459_v20 = vpop.eup %1872 }
 0x37d   : > { %1201 = vrot.lane.b32.xlu0 %v2459_v20, %s2005_s21  ;;  %v2463_v17 = vpop.eup %1874 }
 0x37e   : > { %1203 = vrot.lane.b32.xlu1 %v2463_v17, %s2005_s21  ;;  %v2467_v51 = vpop.eup %1876 }
 0x37f   : > { %v2471_v29 = vpop.eup %1878 }
 0x381   : > { %1205 = vrot.lane.b32.xlu0 %v2467_v51, %s2005_s21 }
 0x382   : > { %1207 = vrot.lane.b32.xlu1 %v2471_v29, %s2005_s21 }
 0x385   : > { %1221 = vrot.lane.b32.xlu0 %v2459_v20, %s2006_s22 }
 0x386   : > { %1223 = vrot.lane.b32.xlu1 %v2463_v17, %s2006_s22 }
 0x389   : > { %1225 = vrot.lane.b32.xlu0 %v2467_v51, %s2006_s22 }
 0x38a   : > { %1227 = vrot.lane.b32.xlu1 %v2471_v29, %s2006_s22  ;;  %s2570_s22 = scalar_lea.vmem [#allocation6], %s1718_s15  ;;  %s1749_s15 = sshll.u32 %s1992_s30, 9 }
 0x38b   : > { %s2592_s11 = scalar_lea.hbm %s2650_s8, %s1749_s15  ;;  %s2009_s30 = smov [#allocation6]  }
 0x38c   : > { %s1922_s12 = sshll.u32 %s2009_s30, 4  ;;  %s1923_s12 = int_to_ptr.vmem [resolvable:$false] %s1922_s12 }
 0x38d   : > { %1245 = vrot.lane.b32.xlu0 %v2459_v20, %s2007_s24  ;;  %s1924_s14 = scalar_lea.vmem %s1923_s12, 1024 }
 0x38e   : > { %1247 = vrot.lane.b32.xlu1 %v2463_v17, %s2007_s24 }
 0x391   : > { %1249 = vrot.lane.b32.xlu0 %v2467_v51, %s2007_s24 }
 0x392   : > { %1251 = vrot.lane.b32.xlu1 %v2471_v29, %s2007_s24  ;;  %s1626_s24 = sshll.u32 %s2570_s22, 4  ;;  %s2594_s24 = int_to_ptr.vmem [resolvable:$true] %s1626_s24 }
 0x393   : > { %s1918_s26 = scalar_lea.vmem %s2594_s24, 512  ;;  %p1925_p7 = scmp.lt.s32.totalorder %s2594_s24, %s1923_s12 }
 0x394   : > { %p1919_p8 = scmp.ne.s32.totalorder %s2594_s24, %s1918_s26  ;;  %p1926_p13 = scmp.lt.s32.totalorder %s1924_s14, %s1918_s26 }
 0x395   : > { %1265 = vrot.lane.b32.xlu0 %v2459_v20, %s2008_s25 }
 0x396   : > { %1267 = vrot.lane.b32.xlu1 %v2463_v17, %s2008_s25  ;;  %p1920_p11 = pnand %p1919_p8, %p2659_p9  ;;  %p1927_p3 = por %p1926_p13, %p1925_p7 }
 0x398   : > { %p1921_p0 = pneg %p1920_p11 }
 0x399   : > { %1269 = vrot.lane.b32.xlu0 %v2467_v51, %s2008_s25 }
 0x39a   : > { %1271 = vrot.lane.b32.xlu1 %v2471_v29, %s2008_s25  ;;  %p1928_p6 = pnand %p1927_p3, %p1921_p0 }
 0x39d   : > { %876 = vperm.xlu0 %1850, %v347_v8  }
 0x3ef   : > { %v1202_v52 = vpop.permute.xlu0 %1201 }
 0x3f0   : > { %v1204_v35 = vpop.permute.xlu1 %1203 }
 0x3f1   : > { %v1211_v58 = vsel %vm535_vm2, %v1202_v52, %v1204_v35 }
 0x3f2   : > { %v1214_v6 = vmul.f32 %v1211_v58, %v2317_v53 }
 0x3f3   : > { %v1206_v37 = vpop.permute.xlu0 %1205 }
 0x3f4   : > { %v1208_v32 = vpop.permute.xlu1 %1207  ;;  %v1210_v15 = vsel %vm535_vm2, %v1204_v35, %v1206_v37 }
 0x3f5   : > { %v1209_v11 = vsel %vm535_vm2, %v1206_v37, %v1208_v32  ;;  %v1212_v12 = vsel %vm535_vm2, %v1208_v32, %v1202_v52  ;;  %v1215_v7 = vmul.f32 %v1210_v15, %v2320_v54 }
 0x3f6   : > { %v1213_v34 = vmul.f32 %v1212_v12, %v2292_v41  ;;  %v1216_v39 = vmul.f32 %v1209_v11, %v2281_v36 }
 0x3f7   : > { %v1222_v55 = vpop.permute.xlu0 %1221 }
 0x3f8   : > { %v1224_v60 = vpop.permute.xlu1 %1223 }
 0x3f9   : > { %v1231_v1 = vsel %vm577_vm3, %v1222_v55, %v1224_v60 }
 0x3fa   : > { %v1234_v9 = vmul.f32 %v1231_v1, %v2295_v42 }
 0x3fb   : > { %v1226_v10 = vpop.permute.xlu0 %1225 }
 0x3fc   : > { %v1230_v13 = vsel %vm577_vm3, %v1224_v60, %v1226_v10  ;;  %v1228_v21 = vpop.permute.xlu1 %1227  ;;  %v1766_v22 = vpack.c.bf16 %v1234_v9, %v1214_v6 }
 0x3fd   : > { %v1235_v23 = vmul.f32 %v1230_v13, %v2307_v48  ;;  %v1229_v42 = vsel %vm577_vm3, %v1226_v10, %v1228_v21  ;;  %v1232_v53 = vsel %vm577_vm3, %v1228_v21, %v1222_v55 }
 0x3fe   : > { %v1233_v40 = vmul.f32 %v1232_v53, %v2298_v44  ;;  %v1236_v43 = vmul.f32 %v1229_v42, %v2286_v38  ;;  %1767 = vmatprep.subr.bf16.mxu0 %v1766_v22 }
 0x3ff   : > { %v1246_v45 = vpop.permute.xlu0 %1245  ;;  %v1776_v8 = vpack.c.bf16 %v1235_v23, %v1215_v7 }
 0x400   : > { %v1768_v46 = vpack.c.bf16 %v1233_v40, %v1213_v34  ;;  %v1248_v48 = vpop.permute.xlu1 %1247  ;;  %v1774_v47 = vpack.c.bf16 %v1236_v43, %v1216_v39 }
 0x401   : > { %v1255_v52 = vsel %vm623_vm4, %v1246_v45, %v1248_v48 }
 0x402   : > { %1769 = vmatpush1.bf16.msra.mxu0 %v1768_v46  ;;  %1775 = vmatprep.subr.bf16.mxu1 %v1774_v47  ;;  %v1257_v36 = vmul.f32 %v1255_v52, %v2326_v56 }
 0x403   : > { %v1250_v41 = vpop.permute.xlu0 %1249  ;;  %1777 = vmatpush1.bf16.msra.mxu1 %v1776_v8 }
 0x404   : > { %v1254_v38 = vsel %vm623_vm4, %v1248_v48, %v1250_v41  ;;  %v1252_v35 = vpop.permute.xlu1 %1251  ;;  %v1772_v60 = vpack.c.bf16 %v1257_v36, %v2459_v20 }
 0x405   : > { %v1258_v44 = vmul.f32 %v1254_v38, %v2330_v61  ;;  %v1253_v54 = vsel %vm623_vm4, %v1250_v41, %v1252_v35  ;;  %v1256_v37 = vsel %vm623_vm4, %v1252_v35, %v1246_v45 }
 0x406   : > { %v1259_v32 = vmul.f32 %v1253_v54, %v2333_v62  ;;  %v1260_v55 = vmul.f32 %v1256_v37, %v2336_v63 }
 0x407   : > { %v1266_v58 = vpop.permute.xlu0 %1265  ;;  %v1770_v56 = vpack.c.bf16 %v1258_v44, %v2463_v17 }
 0x408   : > { %v1780_v1 = vpack.c.bf16 %v1259_v32, %v2467_v51  ;;  %v1268_v6 = vpop.permute.xlu1 %1267  ;;  %v1778_v61 = vpack.c.bf16 %v1260_v55, %v2471_v29 }
 0x409   : > { %1771 = vmatprep.subr.bf16.mxu0 %v1770_v56  ;;  %v1275_v9 = vsel %vm665_vm5, %v1266_v58, %v1268_v6 }
 0x40a   : > { %1773 = vmatpush1.bf16.msra.mxu0 %v1772_v60  ;;  %1779 = vmatprep.subr.bf16.mxu1 %v1778_v61  ;;  %v1277_v20 = vmul.f32 %v1275_v9, %v2377_v50 }
 0x40b   : > { %v1270_v10 = vpop.permute.xlu0 %1269  ;;  %1781 = vmatpush1.bf16.msra.mxu1 %v1780_v1 }
 0x40c   : > { %v1274_v62 = vsel %vm665_vm5, %v1268_v6, %v1270_v10  ;;  %v1272_v17 = vpop.permute.xlu1 %1271 }
 0x40d   : > { %v1278_v63 = vmul.f32 %v1274_v62, %v2371_v19  ;;  %v1273_v51 = vsel %vm665_vm5, %v1270_v10, %v1272_v17  ;;  %v1276_v29 = vsel %vm665_vm5, %v1272_v17, %v1266_v58 }
 0x40e   : > { %v1279_v11 = vmul.f32 %v1273_v51, %v2374_v18  ;;  %v1280_v12 = vmul.f32 %v1276_v29, %v2368_v49 }
 0x40f   : > { %1313 = vmatprep.subr.mxu0 %v1278_v63 }
 0x410   : > { %1314 = vmatpush1.msra.mxu0 %v1277_v20  ;;  %1384 = vmatprep.subr.mxu1 %v1280_v12 }
 0x411   : > { %1739 = vmatmul.mubr.msk.f32.vlgmr.msra.gmra.mrb[8].mxu0 %vm724_vm6, %v2393_v57  ;;  %1385 = vmatpush1.msra.mxu1 %v1279_v11 }
 0x412   : > { %1515 = vmatprep.mubr.f32.mxu0 %v2003_v0  ;;  %1740 = vmatmul.mubr.msk.f32.vlgmr.msra.gmra.mrb[8].mxu1 %vm724_vm6, %v2393_v57 }
 0x413   : > { %1586 = vmatprep.mubr.f32.mxu1 %v2003_v0 }
 0x41c   : > { %v877_v26 = vpop.permute.xlu0 %876 }
 0x41d   : > { %v950_v19 = vadd.f32 %v2447_v28, %v877_v26  ;;  %v952_v49 = vadd.f32 %v2449_v30, %v877_v26  ;;  %v1021_v18 = vadd.f32 %v2451_v31, %v877_v26  ;;  %v1023_v50 = vadd.f32 %v2453_v33, %v877_v26 }
 0x41f   : > { %v1027_v13 = vadd.f32 %v950_v19, %v2181_v2  ;;  %v1028_v15 = vadd.f32 %v952_v49, %v2188_v4  ;;  %v1029_v21 = vadd.f32 %v1021_v18, %v2184_v3  ;;  %v1030_v22 = vadd.f32 %v1023_v50, %v2192_v5 }
 0x421   : > { %v1035_v57 = vcombine.low %v1027_v13, %v1028_v15  ;;  %v1036_v23 = vcombine.low %v1029_v21, %v1030_v22 }
 0x423   : > { %1039 = vst [vmem:[%s2570_s22] sm:$0xff] %v1035_v57  ;;  %1040 = vst [vmem:[%s2570_s22 + $0x8] sm:$0xff] %v1036_v23 }
 0x4e4   : > { %v1371_v0 = vpop.f32.mrb[8].mxu0 }
 0x4e5   : > { %v1372_v28 = vadd.f32 %v1371_v0, %v2402_v59  ;;  %v1373_v30 = vpop.f32.mrb[9].mxu0  ;;  %v1442_v4 = vpop.f32.mrb[8].mxu1 }
 0x4e6   : > { %v1374_v2 = vadd.f32 %v1373_v30, %v2402_v59  ;;  %v1443_v3 = vadd.f32 %v1442_v4, %v2402_v59  ;;  %v1444_v31 = vpop.f32.mrb[9].mxu1 }
 0x4e7   : > { %v1445_v5 = vadd.f32 %v1444_v31, %v2402_v59 }
 0x4e8   : > { %1880 = vtanh.f32 %v1374_v2 }
 0x4e9   : > { %1882 = vtanh.f32 %v1372_v28 }
 0x4ea   : > { %1884 = vtanh.f32 %v1445_v5 }
 0x4eb   : > { %1886 = vtanh.f32 %v1443_v3 }
 0x4f2   : > { %v1881_v33 = vpop.eup %1880 }
 0x4f3   : > { %v1883_v42 = vpop.eup %1882  ;;  %1451 = vmatprep.subr.mxu0 %v1881_v33 }
 0x4f4   : > { %v1885_v53 = vpop.eup %1884  ;;  %1452 = vmatpush1.msra.mxu0 %v1883_v42 }
 0x4f5   : > { %v1887_v34 = vpop.eup %1886  ;;  %1522 = vmatprep.subr.mxu1 %v1885_v53  ;;  %1741 = vmatmul.mubr.msk.f32.vlgmr.msra.gmra.mrb[10].mxu0 %vm879_vm7, %v2417_v24 }
 0x4f6   : > { %1523 = vmatpush1.msra.mxu1 %v1887_v34 }
 0x4f7   : > { %1742 = vmatmul.mubr.msk.f32.vlgmr.msra.gmra.mrb[10].mxu1 %vm879_vm7, %v2417_v24 }
 0x5c8   : > { %v1517_v59 = vpop.f32.mrb[10].mxu0 }
 0x5c9   : > { %v1518_v39 = vadd.f32 %v1517_v59, %v877_v26  ;;  %v1519_v40 = vpop.f32.mrb[11].mxu0 }
 0x5ca   : > { %v1520_v43 = vadd.f32 %v1519_v40, %v877_v26  ;;  %v1588_v45 = vpop.f32.mrb[10].mxu1 }
 0x5cb   : > { %v1595_v7 = vadd.f32 %v1518_v39, %v2409_v14  ;;  %v1589_v46 = vadd.f32 %v1588_v45, %v877_v26  ;;  %v1590_v48 = vpop.f32.mrb[11].mxu1 }
 0x5cc   : > { %v1596_v47 = vadd.f32 %v1520_v43, %v2421_v25  ;;  %v1591_v8 = vadd.f32 %v1590_v48, %v877_v26 }
 0x5cd   : > { %v1597_v52 = vadd.f32 %v1589_v46, %v2412_v16 }
 0x5ce   : > { %v1603_v24 = vcombine.low %v1595_v7, %v1596_v47  ;;  %v1598_v41 = vadd.f32 %v1591_v8, %v2425_v27 }
 0x5d0   : > { %1607 = vst [vmem:[%s2570_s22 + $0x10] sm:$0xff] %v1603_v24  ;;  %v1604_v36 = vcombine.low %v1597_v52, %v1598_v41 }
 0x5d2   : > { %1608 = vst [vmem:[%s2570_s22 + $0x18] sm:$0xff] %v1604_v36 }
 0x5d3   : > { %1931 = shalt.err (!%p1928_p6)
}
 0x5d4   : > { %s1932_s23 = scalar_lea.hbm %s2592_s11, 512  ;;  %s1936_s15 = scalar_lea.hbm %s2650_s8, 1024 }
 0x5d5   : > { %p1933_p4 = scmp.ne.s32.totalorder %s2592_s11, %s1932_s23  ;;  %p1937_p1 = scmp.lt.u32.totalorder %s2592_s11, %s2650_s8 }
 0x5d6   : > { %p1938_p2 = scmp.lt.u32.totalorder %s1936_s15, %s1932_s23  ;;  %p1940_p8 = scmp.lt.u32.totalorder %s1932_s23, %s2592_s11 }
 0x5d7   : > { %p1934_p10 = pnand %p1933_p4, %p2659_p9 }
 0x5d8   : > { %p1939_p5 = por %p1938_p2, %p1937_p1 }
 0x5d9   : > { %p1935_p12 = pneg %p1934_p10 }
 0x5da   : > { %p1941_p11 = por %p1940_p8, %p1939_p5 }
 0x5dc   : > { %p1942_p0 = pnand %p1941_p11, %p1935_p12 }
 0x5de   : > { %1945 = shalt.err (!%p1942_p0)
}
 0x5df   : > { %1784 = dma.vmem_to_hbm [thread:$0]  (%p2659_p9), %s2594_s24, 512, %s2592_s11, %s1610_s17  }
 0x5e0 PF: > { %s1638_s26 = sand.u32 1, %s1980_s27   ;;  %p2660_p7 = scmp.ne.s32.totalorder %s2655_s20, 0 }
 0x5e1   : > { %p2661_p13 = scmp.ge.s32.totalorder %s2000_s10, 2  ;;  %s1639_s30 = scalar_lea.sflag [#allocation5], %s1638_s26 }
 0x5e3   : > { %p1791_p3 = pnand %p2661_p13, %p2660_p7 }
 0x5e5   : > { %1975 = dma.done.wait (!%p1791_p3), %s1639_s30, 512  }
 0x5e6   : > { %1977 = vsyncadd (!%p1791_p3), %s1639_s30, 4294966784  ;;  %s24_s10 = sadd.s32 1, %s2000_s10   ;;  %s2662_s27 = smov %s1984_s28 }
 0x5e7   : > { %p21_p6 = scmp.ge.s32.totalorder %s24_s10, 4   ;;  %s2663_s28 = smov %s1988_s29 }
 0x5e8   : > { %s2664_s29 = smov %s2111_s19  ;;  %s2665_s30 = smov %s1996_s9 }
 0x5e9   : > { %s2666_s9 = smov %s2668_s13  ;;  %23 = sbr.rel (!%p21_p6) target bundleno = 6 (0x6), region = 100 }
 0x5f0   :  { %1644 = vsyncpa [#allocation4], 1 }
 0x5f1   :  { %1646 = vsyncpa [#allocation4 + $0x1], 1 }
 0x5f2   :  { %1647 = vsyncpa [#allocation5], 1 }
 0x5f3   :  { %1649 = vsyncpa [#allocation5 + $0x1], 1 }

</bundles_post_ra>
